<compile_context>
chip_gen: v6e
topology: v6e:2x2x1
jax: 0.10.0
libtpu: 0.0.40
codegen_flags: <defaults>
</compile_context>

<pallas_src>
import jax
import jax.numpy as jnp
from jax.experimental import pallas as pl
from jax.experimental.pallas import tpu as pltpu


def autoencoder_kernel(x_ref,
                       w1_ref, b1_ref,
                       w2_ref, b2_ref,
                       w3_ref, b3_ref,
                       w4_ref, b4_ref,
                       o_ref):
    # x_ref: (input_dim, TILE_B) bf16 — batch on the lane axis.
    x = x_ref[...]

    # encoder: Linear(input_dim, 16) + ReLU
    h = jnp.dot(w1_ref[...], x, preferred_element_type=jnp.float32) + b1_ref[...]
    h = jnp.maximum(h, 0.0).astype(jnp.bfloat16)
    # encoder: Linear(16, 8) + ReLU
    h = jnp.dot(w2_ref[...], h, preferred_element_type=jnp.float32) + b2_ref[...]
    h = jnp.maximum(h, 0.0).astype(jnp.bfloat16)
    # decoder: Linear(8, 16) + ReLU
    h = jnp.dot(w3_ref[...], h, preferred_element_type=jnp.float32) + b3_ref[...]
    h = jnp.maximum(h, 0.0).astype(jnp.bfloat16)
    # decoder: Linear(16, input_dim)  (no activation)
    y = jnp.dot(w4_ref[...], h, preferred_element_type=jnp.float32) + b4_ref[...]

    o_ref[...] = y.astype(o_ref.dtype)


def autoencoder_forward(x, params, *, tile_b=512):
    """x: (batch, input_dim) float32.
    params: dict name -> (W, b) with W in PyTorch (out, in) layout (f32) and
    b shaped (out, 1) (f32). Weights/activations are cast to bf16 for the MXU;
    accumulation and the final output stay f32."""
    batch, input_dim = x.shape
    (w1, b1), (w2, b2), (w3, b3), (w4, b4) = (
        params["enc1"], params["enc2"], params["dec1"], params["dec2"])

    # Batch tile: multiple of 128 lanes (works for v5e's 4x128 MXU and the
    # 256-wide MXU on v6e/v7x); clamp so tiny test batches still work.
    padded = pl.cdiv(batch, 128) * 128
    tile_b = min(tile_b, padded)
    tile_b = max(128, (tile_b // 128) * 128)
    padded = pl.cdiv(padded, tile_b) * tile_b
    grid = (padded // tile_b,)

    # Batch on the lane axis, bf16 streaming input, zero-padded to the grid.
    xt = jnp.pad(x.T.astype(jnp.bfloat16), ((0, 0), (0, padded - batch)))

    w1b, w2b, w3b, w4b = (w.astype(jnp.bfloat16) for w in (w1, w2, w3, w4))

    resident = lambda a: pl.BlockSpec(a.shape, lambda i: (0,) * a.ndim)

    out_t = pl.pallas_call(
        autoencoder_kernel,
        out_shape=jax.ShapeDtypeStruct((input_dim, padded), jnp.float32),
        grid=grid,
        in_specs=[pl.BlockSpec((input_dim, tile_b), lambda i: (0, i)),
                  resident(w1b), resident(b1),
                  resident(w2b), resident(b2),
                  resident(w3b), resident(b3),
                  resident(w4b), resident(b4)],
        out_specs=pl.BlockSpec((input_dim, tile_b), lambda i: (0, i)),
        compiler_params=pltpu.CompilerParams(
            dimension_semantics=("parallel",)),
    )(xt, w1b, b1, w2b, b2, w3b, b3, w4b, b4)

    return out_t.T[:batch]


def init_params(key, input_dim):
    """Deterministic init matching the PyTorch layer shapes.
    nn.Linear(in, out) has weight (out, in), bias (out,).  We keep the
    PyTorch (out, in) weight layout and store bias as (out, 1)."""
    def linear(k, fan_in, fan_out):
        kw, kb = jax.random.split(k)
        bound = 1.0 / jnp.sqrt(fan_in)
        w = jax.random.uniform(kw, (fan_out, fan_in), jnp.float32, -bound, bound)
        b = jax.random.uniform(kb, (fan_out, 1), jnp.float32, -bound, bound)
        return w, b

    k1, k2, k3, k4 = jax.random.split(key, 4)
    return {
        "enc1": linear(k1, input_dim, 16),
        "enc2": linear(k2, 16, 8),
        "dec1": linear(k3, 8, 16),
        "dec2": linear(k4, 16, input_dim),
    }


def reference_forward(x, params):
    """Plain-JAX reference mirroring the kernel's bf16-input / f32-accumulate
    numerics (same math as the PyTorch module, reduced-precision inputs)."""
    h = x.T.astype(jnp.bfloat16)
    for name, act in (("enc1", True), ("enc2", True),
                      ("dec1", True), ("dec2", False)):
        w, b = params[name]
        h = jnp.dot(w.astype(jnp.bfloat16), h,
                    preferred_element_type=jnp.float32) + b
        if act:
            h = jnp.maximum(h, 0.0).astype(jnp.bfloat16)
    return h.T


if __name__ == "__main__":
    key = jax.random.PRNGKey(0)
    kx, kp = jax.random.split(key)

    batch, input_dim = 256, 32          # batch > tile -> exercises the grid
    x = jax.random.normal(kx, (batch, input_dim), jnp.float32)
    params = init_params(kp, input_dim)

    out = autoencoder_forward(x, params, tile_b=128)   # grid of 2 batch tiles
    out = jax.block_until_ready(out)

    ref = reference_forward(x, params)
    assert out.shape == (batch, input_dim)
    assert jnp.allclose(out, ref, atol=1e-2, rtol=1e-2), "mismatch vs reference"

    print("KERNEL_OK")
</pallas_src>

<mosaic_0001>
module attributes {stable_mosaic.version = 11 : i64} {
  func.func @autoencoder_kernel(%arg0: i32, %arg1: memref<32x128xbf16, #tpu.memory_space<vmem>>, %arg2: memref<16x32xbf16, #tpu.memory_space<vmem>>, %arg3: memref<16x1xf32, #tpu.memory_space<vmem>>, %arg4: memref<8x16xbf16, #tpu.memory_space<vmem>>, %arg5: memref<8x1xf32, #tpu.memory_space<vmem>>, %arg6: memref<16x8xbf16, #tpu.memory_space<vmem>>, %arg7: memref<16x1xf32, #tpu.memory_space<vmem>>, %arg8: memref<32x16xbf16, #tpu.memory_space<vmem>>, %arg9: memref<32x1xf32, #tpu.memory_space<vmem>>, %arg10: memref<32x128xf32, #tpu.memory_space<vmem>>) attributes {dimension_semantics = [#tpu.dimension_semantics<parallel>], iteration_bounds = array<i64: 2>, scalar_prefetch = 0 : i64, scratch_operands = 0 : i64, tpu.core_type = #tpu.core_type<tc>, window_params = [{transform_indices = @transform_0, window_bounds = array<i64: 32, 128>}, {pipeline_mode = #tpu.pipeline_mode<synchronous>, transform_indices = @transform_1, window_bounds = array<i64: 16, 32>}, {pipeline_mode = #tpu.pipeline_mode<synchronous>, transform_indices = @transform_2, window_bounds = array<i64: 16, 1>}, {pipeline_mode = #tpu.pipeline_mode<synchronous>, transform_indices = @transform_3, window_bounds = array<i64: 8, 16>}, {pipeline_mode = #tpu.pipeline_mode<synchronous>, transform_indices = @transform_4, window_bounds = array<i64: 8, 1>}, {pipeline_mode = #tpu.pipeline_mode<synchronous>, transform_indices = @transform_5, window_bounds = array<i64: 16, 8>}, {pipeline_mode = #tpu.pipeline_mode<synchronous>, transform_indices = @transform_6, window_bounds = array<i64: 16, 1>}, {pipeline_mode = #tpu.pipeline_mode<synchronous>, transform_indices = @transform_7, window_bounds = array<i64: 32, 16>}, {pipeline_mode = #tpu.pipeline_mode<synchronous>, transform_indices = @transform_8, window_bounds = array<i64: 32, 1>}, {transform_indices = @transform_9, window_bounds = array<i64: 32, 128>}]} {
    %c0 = arith.constant 0 : index
    %c0_0 = arith.constant 0 : index
    %0 = vector.load %arg1[%c0, %c0_0] : memref<32x128xbf16, #tpu.memory_space<vmem>>, vector<32x128xbf16>
    %c0_1 = arith.constant 0 : index
    %c0_2 = arith.constant 0 : index
    %1 = vector.load %arg2[%c0_1, %c0_2] : memref<16x32xbf16, #tpu.memory_space<vmem>>, vector<16x32xbf16>
    %cst = arith.constant dense<0.000000e+00> : vector<16x128xf32>
    %2 = tpu.matmul %1, %0, %cst {dimension_numbers = #tpu.dot_dimension_numbers<[1], [0], [0], [1], [0, 0, 1, 1], [], []>} : vector<16x32xbf16>, vector<32x128xbf16>, vector<16x128xf32> -> vector<16x128xf32>
    %c0_3 = arith.constant 0 : index
    %c0_4 = arith.constant 0 : index
    %3 = vector.load %arg3[%c0_3, %c0_4] : memref<16x1xf32, #tpu.memory_space<vmem>>, vector<16x1xf32>
    %4 = vector.broadcast %3 : vector<16x1xf32> to vector<16x128xf32>
    %5 = arith.addf %2, %4 : vector<16x128xf32>
    %cst_5 = arith.constant 0.000000e+00 : f32
    %6 = vector.broadcast %cst_5 : f32 to vector<16x128xf32>
    %7 = arith.maximumf %5, %6 : vector<16x128xf32>
    %8 = arith.truncf %7 : vector<16x128xf32> to vector<16x128xbf16>
    %c0_6 = arith.constant 0 : index
    %c0_7 = arith.constant 0 : index
    %9 = vector.load %arg4[%c0_6, %c0_7] : memref<8x16xbf16, #tpu.memory_space<vmem>>, vector<8x16xbf16>
    %cst_8 = arith.constant dense<0.000000e+00> : vector<8x128xf32>
    %10 = tpu.matmul %9, %8, %cst_8 {dimension_numbers = #tpu.dot_dimension_numbers<[1], [0], [0], [1], [0, 0, 1, 1], [], []>} : vector<8x16xbf16>, vector<16x128xbf16>, vector<8x128xf32> -> vector<8x128xf32>
    %c0_9 = arith.constant 0 : index
    %c0_10 = arith.constant 0 : index
    %11 = vector.load %arg5[%c0_9, %c0_10] : memref<8x1xf32, #tpu.memory_space<vmem>>, vector<8x1xf32>
    %12 = vector.broadcast %11 : vector<8x1xf32> to vector<8x128xf32>
    %13 = arith.addf %10, %12 : vector<8x128xf32>
    %cst_11 = arith.constant 0.000000e+00 : f32
    %14 = vector.broadcast %cst_11 : f32 to vector<8x128xf32>
    %15 = arith.maximumf %13, %14 : vector<8x128xf32>
    %16 = arith.truncf %15 : vector<8x128xf32> to vector<8x128xbf16>
    %c0_12 = arith.constant 0 : index
    %c0_13 = arith.constant 0 : index
    %17 = vector.load %arg6[%c0_12, %c0_13] : memref<16x8xbf16, #tpu.memory_space<vmem>>, vector<16x8xbf16>
    %cst_14 = arith.constant dense<0.000000e+00> : vector<16x128xf32>
    %18 = tpu.matmul %17, %16, %cst_14 {dimension_numbers = #tpu.dot_dimension_numbers<[1], [0], [0], [1], [0, 0, 1, 1], [], []>} : vector<16x8xbf16>, vector<8x128xbf16>, vector<16x128xf32> -> vector<16x128xf32>
    %c0_15 = arith.constant 0 : index
    %c0_16 = arith.constant 0 : index
    %19 = vector.load %arg7[%c0_15, %c0_16] : memref<16x1xf32, #tpu.memory_space<vmem>>, vector<16x1xf32>
    %20 = vector.broadcast %19 : vector<16x1xf32> to vector<16x128xf32>
    %21 = arith.addf %18, %20 : vector<16x128xf32>
    %cst_17 = arith.constant 0.000000e+00 : f32
    %22 = vector.broadcast %cst_17 : f32 to vector<16x128xf32>
    %23 = arith.maximumf %21, %22 : vector<16x128xf32>
    %24 = arith.truncf %23 : vector<16x128xf32> to vector<16x128xbf16>
    %c0_18 = arith.constant 0 : index
    %c0_19 = arith.constant 0 : index
    %25 = vector.load %arg8[%c0_18, %c0_19] : memref<32x16xbf16, #tpu.memory_space<vmem>>, vector<32x16xbf16>
    %cst_20 = arith.constant dense<0.000000e+00> : vector<32x128xf32>
    %26 = tpu.matmul %25, %24, %cst_20 {dimension_numbers = #tpu.dot_dimension_numbers<[1], [0], [0], [1], [0, 0, 1, 1], [], []>} : vector<32x16xbf16>, vector<16x128xbf16>, vector<32x128xf32> -> vector<32x128xf32>
    %c0_21 = arith.constant 0 : index
    %c0_22 = arith.constant 0 : index
    %27 = vector.load %arg9[%c0_21, %c0_22] : memref<32x1xf32, #tpu.memory_space<vmem>>, vector<32x1xf32>
    %28 = vector.broadcast %27 : vector<32x1xf32> to vector<32x128xf32>
    %29 = arith.addf %26, %28 : vector<32x128xf32>
    %c0_23 = arith.constant 0 : index
    %c0_24 = arith.constant 0 : index
    %30 = vector.load %arg10[%c0_23, %c0_24] : memref<32x128xf32, #tpu.memory_space<vmem>>, vector<32x128xf32>
    tpu.vector_store %arg10[%c0_23, %c0_24], %29 {strides = array<i32>} : memref<32x128xf32, #tpu.memory_space<vmem>>, vector<32x128xf32>,
    return
  }
  func.func @transform_0(%arg0: i32) -> (i32, i32) {
    %c0_i32 = arith.constant 0 : i32
    %c0_i32_0 = arith.constant 0 : i32
    return %c0_i32, %arg0 : i32, i32
  }
  func.func @transform_1(%arg0: i32) -> (i32, i32) {
    %c0_i32 = arith.constant 0 : i32
    %c0_i32_0 = arith.constant 0 : i32
    %c0_i32_1 = arith.constant 0 : i32
    return %c0_i32, %c0_i32_0 : i32, i32
  }
  func.func @transform_2(%arg0: i32) -> (i32, i32) {
    %c0_i32 = arith.constant 0 : i32
    %c0_i32_0 = arith.constant 0 : i32
    %c0_i32_1 = arith.constant 0 : i32
    return %c0_i32, %c0_i32_0 : i32, i32
  }
  func.func @transform_3(%arg0: i32) -> (i32, i32) {
    %c0_i32 = arith.constant 0 : i32
    %c0_i32_0 = arith.constant 0 : i32
    %c0_i32_1 = arith.constant 0 : i32
    return %c0_i32, %c0_i32_0 : i32, i32
  }
  func.func @transform_4(%arg0: i32) -> (i32, i32) {
    %c0_i32 = arith.constant 0 : i32
    %c0_i32_0 = arith.constant 0 : i32
    %c0_i32_1 = arith.constant 0 : i32
    return %c0_i32, %c0_i32_0 : i32, i32
  }
  func.func @transform_5(%arg0: i32) -> (i32, i32) {
    %c0_i32 = arith.constant 0 : i32
    %c0_i32_0 = arith.constant 0 : i32
    %c0_i32_1 = arith.constant 0 : i32
    return %c0_i32, %c0_i32_0 : i32, i32
  }
  func.func @transform_6(%arg0: i32) -> (i32, i32) {
    %c0_i32 = arith.constant 0 : i32
    %c0_i32_0 = arith.constant 0 : i32
    %c0_i32_1 = arith.constant 0 : i32
    return %c0_i32, %c0_i32_0 : i32, i32
  }
  func.func @transform_7(%arg0: i32) -> (i32, i32) {
    %c0_i32 = arith.constant 0 : i32
    %c0_i32_0 = arith.constant 0 : i32
    %c0_i32_1 = arith.constant 0 : i32
    return %c0_i32, %c0_i32_0 : i32, i32
  }
  func.func @transform_8(%arg0: i32) -> (i32, i32) {
    %c0_i32 = arith.constant 0 : i32
    %c0_i32_0 = arith.constant 0 : i32
    %c0_i32_1 = arith.constant 0 : i32
    return %c0_i32, %c0_i32_0 : i32, i32
  }
  func.func @transform_9(%arg0: i32) -> (i32, i32) {
    %c0_i32 = arith.constant 0 : i32
    %c0_i32_0 = arith.constant 0 : i32
    return %c0_i32, %arg0 : i32, i32
  }
}

</mosaic_0001>

<bundles_post_ra>
// kernel: tpu_custom_call.1
= control target key start
LH: loop header
LB: loop body
LE: loop exit
PB: predicated region body
PF: predicated region fallthrough
CT: control target
= control target key end

     0   :  { %14 = vsyncpa [#allocation4], 0  ;;  %s1162_s0 = inlined_call_operand.vmem [shape: bf16[32,256], index: 0, kind: input, shape index: {}]   ;;  %s1163_s1 = inlined_call_operand.vmem [shape: bf16[16,32], index: 1, kind: input, shape index: {}]   ;;  %s1164_s2 = inlined_call_operand.vmem [shape: f32[16,1], index: 2, kind: input, shape index: {}]   ;;  %s1165_s3 = inlined_call_operand.vmem [shape: bf16[8,16], index: 3, kind: input, shape index: {}]   ;;  %s1166_s4 = inlined_call_operand.vmem [shape: f32[8,1], index: 4, kind: input, shape index: {}]   ;;  %s1167_s5 = inlined_call_operand.vmem [shape: bf16[16,8], index: 5, kind: input, shape index: {}]   ;;  %s1168_s6 = inlined_call_operand.vmem [shape: f32[16,1], index: 6, kind: input, shape index: {}]   ;;  %s1169_s7 = inlined_call_operand.vmem [shape: bf16[32,16], index: 7, kind: input, shape index: {}]   ;;  %s1170_s8 = inlined_call_operand.vmem [shape: f32[32,1], index: 8, kind: input, shape index: {}]   ;;  %s1171_s9 = inlined_call_operand.hbm [shape: f32[32,256], index: 9, kind: output, shape index: {}]  }
   0x1   :  { %16 = vsyncpa [#allocation4 + $0x1], 0  ;;  %s1003_s30 = smov 0   ;;  %s1005_s10 = smov 0  }
   0x2   :  { %s1007_s11 = smov 0   ;;  %s1009_s12 = smov 0  }
   0x3 LB: > { %s771_s13 = sadd.s32 4294967295, %s944_s12   ;;  %s772_s14 = sadd.s32 4294967294, %s944_s12   ;;  %s944_s12 = sphi %s1009_s12, %s1177_s12   ;;  %s940_s11 = sphi %s1007_s11, %s1176_s11   ;;  %s936_s10 = sphi %s1005_s10, %s1175_s10   ;;  %s932_s30 = sphi %s1003_s30, %s1174_s30  }
   0x4   : > { %s1026_s15 = sadd.s32 1, %s944_s12   ;;  %s29_s16 = sadd.s32 1, %s940_s11 }
   0x5   : > { %s26_s17 = ssub.s32 %s944_s12, %s1026_s15  ;;  %p36_p0 = scmp.ne.s32.totalorder %s940_s11, %s936_s10 }
   0x6   : > { %p27_p1 = scmp.eq.s32.totalorder %s26_s17, 0  ;;  %p37_p2 = scmp.eq.s32.totalorder %s944_s12, 0 }
   0x7   : > { %p234_p3 = scmp.eq.s32.totalorder %s771_s13, 1  ;;  %p239_p4 = scmp.ne.s32.totalorder %s936_s10, %s932_s30 }
   0x8   : > { %s1039_s18 = scalar_select %p27_p1, %s940_s11, %s29_s16  }
   0x9   : > { %p38_p5 = por %p37_p2, %p36_p0  ;;  %p1041_p6 = por %p234_p3, %p36_p0 }
   0xa   : > { %p240_p7 = scmp.eq.s32.totalorder %s772_s14, 1  ;;  %p774_p9 = scmp.ge.s32.totalorder %s944_s12, 2 }
   0xc   : > { %p1045_p8 = por %p240_p7, %p239_p4  ;;  %280 = sbr.rel (%p774_p9) target bundleno = 23 (0x17), region = 48 }
  0x11   : > { %283 = sbr.rel (!%p38_p5) target bundleno = 23 (0x17), region = 52  ;;  %s285_s21 = sand.u32 (%p38_p5), 1, %s940_s11  }
  0x12   : > { %s776_s22 = sshll.u32 (%p38_p5), %s944_s12, 2  ;;  %s775_s23 = sshll.u32 (%p38_p5), %s285_s21, 4 }
  0x13   : > { %s289_s26 = scalar_lea.vmem (%p38_p5), %s1162_s0, %s776_s22  ;;  %s287_s27 = scalar_lea.vmem (%p38_p5), [#allocation2], %s775_s23 }
  0x14   : > { %v306_v0 = vld [vmem:[%s289_s26] sm:$0xf] (%p38_p5)  ;;  %v308_v1 = vld [vmem:[%s289_s26 + $0x8] sm:$0xf] (%p38_p5)  ;;  %v310_v2 = vld [vmem:[%s289_s26 + $0x10] sm:$0xf] (%p38_p5) }
  0x15   : > { %307 = vst [vmem:[%s287_s27] sm:$0xf] (%p38_p5), %v306_v0  ;;  %309 = vst [vmem:[%s287_s27 + $0x4] sm:$0xf] (%p38_p5), %v308_v1  ;;  %v312_v3 = vld [vmem:[%s289_s26 + $0x18] sm:$0xf] (%p38_p5) }
  0x16   : > { %311 = vst [vmem:[%s287_s27 + $0x8] sm:$0xf] %v310_v2  ;;  %313 = vst [vmem:[%s287_s27 + $0xc] sm:$0xf] %v312_v3 }
  0x17 PF: > { %p777_p10 = scmp.ge.s32.totalorder %s944_s12, 1  ;;  %p344_p11 = scmp.lt.s32.totalorder %s944_s12, 3 }
  0x19   : > { %p345_p12 = pnand %p777_p10, %p344_p11 }
  0x1a   : > { %s1060_s28 = sand.u32 (!%p345_p12), 1, %s936_s10   ;;  %s949_s22 = smov (!%p345_p12), [#allocation3]  }
  0x1b   : > { %348 = sbr.rel (%p345_p12) target bundleno = 875 (0x36b), region = 93  ;;  %s778_s29 = sshll.u32 (!%p345_p12), %s1060_s28, 4 }
  0x1c   : > { %s353_s17 = scalar_lea.vmem (!%p345_p12), [#allocation2], %s778_s29  ;;  %s779_s25 = sshll.u32 (!%p345_p12), %s1060_s28, 5 }
  0x1d   : > { %s385_s26 = scalar_lea.vmem (!%p345_p12), [#allocation3], %s779_s25  ;;  %s792_s29 = sshll.u32 (!%p345_p12), %s771_s13, 7 }
  0x1e   : > { %s704_s27 = sshll.u32 (!%p345_p12), %s385_s26, 4  ;;  %s692_s21 = scalar_lea.sflag (!%p345_p12), [#allocation4], %s1060_s28  ;;  %s1114_s27 = int_to_ptr.vmem [resolvable:$true] %s704_s27 }
  0x1f   : > { %s884_s13 = scalar_lea.vmem (!%p345_p12), %s1114_s27, 512  ;;  %s888_s23 = sshll.u32 (!%p345_p12), %s949_s22, 4  ;;  %s889_s23 = int_to_ptr.vmem [resolvable:$false] %s888_s23 }
  0x20   : > { %v946_v4 = vmov 0.0   ;;  %vm947_vm0 = vmmov 0   ;;  %v948_v5 = vmov 0   ;;  %v393_v6 = vld [vmem:[%s1164_s2] sm:$0xff]  ;;  %v878_v7 = vld [vmem:[%s353_s17 + $0x8] sm:$0xff]   ;;  %vm422_vm1 = vcmask 261120   ;;  %p885_p13 = scmp.ne.s32.totalorder %s1114_s27, %s884_s13  ;;  %p891_p2 = scmp.lt.s32.totalorder %s1114_s27, %s889_s23 }
  0x21   : > { %805 = vmatprep.subr.bf16.mxu0 %v946_v4  ;;  %809 = vmatprep.mubr.msk.bf16.mxu0 %vm947_vm0, %v946_v4  ;;  %v394_v8 = vld [vmem:[%s1164_s2 + $0x8] sm:$0xff]  ;;  %v879_v9 = vld [vmem:[%s353_s17] sm:$0xff]   ;;  %v601_v13 = vld [vmem:[%s1170_s8 + $0x18] sm:$0xff]  ;;  %vm477_vm2 = vcmask 130048   ;;  %vm546_vm3 = vcmask 1043456   ;;  %vm542_vm4 = vcmask 64512   ;;  %s1119_s17 = scalar_lea.hbm %s1171_s9, %s792_s29 }
  0x22   : > { %876 = vset.pattern.permute.xlu0 %v948_v5  ;;  %813 = vmatprep.subr.bf16.mxu1 %v946_v4  ;;  %v880_v10 = vld [vmem:[%s1163_s1] sm:$0xff]   ;;  %v526_v11 = vld [vmem:[%s1168_s6 + $0x8] sm:$0xff]  ;;  %v600_v17 = vld [vmem:[%s1170_s8 + $0x10] sm:$0xff]  ;;  %p886_p0 = pnand %p885_p13, %p1041_p6  ;;  %s890_s24 = scalar_lea.vmem %s889_s23, 1024 }
  0x23   : > { %397 = vperm.xlu0 %876, %v393_v6   ;;  %815 = vmatprep.mubr.msk.bf16.mxu1 %vm947_vm0, %v946_v4  ;;  %v599_v12 = vld [vmem:[%s1170_s8 + $0x8] sm:$0xff]  ;;  %v471_v14 = vld [vmem:[%s1166_s4] sm:$0xff]  ;;  %p892_p3 = scmp.lt.s32.totalorder %s890_s24, %s884_s13 }
  0x24   : > { %877 = vset.pattern.permute.xlu1 %v948_v5  ;;  %806 = vmatpush3.bf16.msra.mxu0 %v878_v7  ;;  %v525_v15 = vld [vmem:[%s1168_s6] sm:$0xff]  ;;  %v883_v52 = vld [vmem:[%s1169_s7 + $0x8] sm:$0xff]   ;;  %p887_p1 = pneg %p886_p0 }
  0x25   : > { %807 = vmatprep.subr.bf16.mxu0 %v946_v4  ;;  %474 = vperm.xlu1 %877, %v471_v14   ;;  %v598_v16 = vld [vmem:[%s1170_s8] sm:$0xff]  ;;  %p893_p4 = por %p892_p3, %p891_p2 }
  0x26   : > { %v470_v29 = vld [vmem:[%s1165_s3] sm:$0xf] }
  0x27   : > { %402 = vperm.xlu0 %876, %v394_v8   ;;  %v881_v39 = vld [vmem:[%s1167_s5] sm:$0xff]   ;;  %p894_p5 = pnand %p893_p4, %p887_p1 }
  0x28   : > { %808 = vmatpush3.bf16.msra.mxu0 %v879_v9  ;;  %v882_v40 = vld [vmem:[%s1169_s7] sm:$0xff]  }
  0x29   : > { %529 = vperm.xlu1 %877, %v525_v15  }
  0x2b   : > { %534 = vperm.xlu0 %876, %v526_v11   ;;  %810 = vmatmul.mubr.msk.bf16.vlgmr.msra.gmra.mxu0 %vm422_vm1, %v880_v10 }
  0x2c   : > { %827 = vmatprep.mubr.msk.bf16.mxu0 %vm477_vm2, %v882_v40 }
  0x2d   : > { %604 = vperm.xlu1 %877, %v598_v16  }
  0x2f   : > { %609 = vperm.xlu0 %876, %v599_v12  }
  0x31   : > { %614 = vperm.xlu1 %877, %v600_v17  }
  0x33   : > { %619 = vperm.xlu0 %876, %v601_v13  }
  0x9e   : > { %v398_v18 = vpop.permute.xlu0 %397 }
  0xa0   : > { %v475_v30 = vpop.permute.xlu1 %474 }
  0xa2   : > { %v403_v22 = vpop.permute.xlu0 %402 }
  0xa4   : > { %v530_v42 = vpop.permute.xlu1 %529 }
  0xa6   : > { %v535_v45 = vpop.permute.xlu0 %534 }
  0xa8   : > { %v605_v53 = vpop.permute.xlu1 %604 }
  0xaa   : > { %v610_v54 = vpop.permute.xlu0 %609 }
  0xac   : > { %v615_v55 = vpop.permute.xlu1 %614 }
  0xae   : > { %v620_v60 = vpop.permute.xlu0 %619 }
  0xeb   : > { %v460_v19 = vpop.f32.mrf.mxu0 }
  0xec   : > { %v461_v21 = vadd.f32 %v460_v19, %v398_v18 }
  0xed   : > { %v811_v20 = vpop.f32.mrf.mxu0 }
  0xee   : > { %v467_v26 = vmax.f32 %v461_v21, 0.0 }
  0xef   : > { %v463_v23 = vpop.f32.mrf.mxu0 }
  0xf0   : > { %v464_v24 = vadd.f32 %v463_v23, %v403_v22 }
  0xf1   : > { %v812_v25 = vpop.f32.mrf.mxu0 }
  0xf2   : > { %v468_v27 = vmax.f32 %v464_v24, 0.0 }
  0xf4   : > { %v469_v28 = vpack.c.bf16 %v468_v27, %v467_v26 }
  0xf6   : > { %814 = vmatpush3.bf16.msra.mxu1 %v469_v28 }
  0xf7   : > { %819 = vmatprep.subr.bf16.mxu1 %v946_v4 }
  0xf9   : > { %816 = vmatmul.mubr.msk.bf16.vlgmr.msra.gmra.mxu1 %vm477_vm2, %v470_v29 }
  0xfa   : > { %821 = vmatprep.mubr.msk.bf16.mxu1 %vm947_vm0, %v946_v4 }
 0x1b9   : > { %v515_v31 = vpop.f32.mrf.mxu1 }
 0x1ba   : > { %v516_v32 = vadd.f32 %v515_v31, %v475_v30 }
 0x1bb   : > { %v817_v33 = vpop.f32.mrf.mxu1 }
 0x1bc   : > { %v521_v34 = vmax.f32 %v516_v32, 0.0 }
 0x1bd   : > { %v518_v35 = vpop.f32.mrf.mxu1 }
 0x1be   : > { %v522_v36 = vpack.c.bf16 %v521_v34, %v521_v34 }
 0x1bf   : > { %v818_v37 = vpop.f32.mrf.mxu1 }
 0x1c0   : > { %v548_v38 = vsel %vm546_vm3, %v522_v36, 0 }
 0x1c1   : > { %820 = vmatpush3.bf16.msra.mxu1 %v548_v38 }
 0x1c4   : > { %822 = vmatmul.mubr.msk.bf16.vlgmr.msra.gmra.mxu1 %vm542_vm4, %v881_v39 }
 0x284   : > { %v584_v41 = vpop.f32.mrf.mxu1 }
 0x285   : > { %v585_v44 = vadd.f32 %v584_v41, %v530_v42 }
 0x286   : > { %v823_v43 = vpop.f32.mrf.mxu1 }
 0x287   : > { %v591_v49 = vmax.f32 %v585_v44, 0.0 }
 0x288   : > { %v587_v46 = vpop.f32.mrf.mxu1 }
 0x289   : > { %v588_v47 = vadd.f32 %v587_v46, %v535_v45 }
 0x28a   : > { %v824_v48 = vpop.f32.mrf.mxu1 }
 0x28b   : > { %v592_v50 = vmax.f32 %v588_v47, 0.0 }
 0x28d   : > { %v593_v51 = vpack.c.bf16 %v592_v50, %v591_v49 }
 0x28f   : > { %825 = vmatprep.subr.bf16.mxu0 %v593_v51 }
 0x290   : > { %826 = vmatpush3.bf16.msra.mxu0 %v593_v51 }
 0x293   : > { %828 = vmatmul.mubr.msk.bf16.vlgmr.msra.gmra.mxu0 %vm477_vm2, %v883_v52 }
 0x353   : > { %v829_v56 = vpop.f32.mrf.mxu0 }
 0x354   : > { %v681_v57 = vadd.f32 %v829_v56, %v615_v55 }
 0x355   : > { %v672_v58 = vpop.f32.mrf.mxu0 }
 0x356   : > { %689 = vst [vmem:[%s385_s26 + $0x10] sm:$0xff] %v681_v57  ;;  %v673_v59 = vadd.f32 %v672_v58, %v605_v53 }
 0x357   : > { %v830_v61 = vpop.f32.mrf.mxu0 }
 0x358   : > { %687 = vst [vmem:[%s385_s26] sm:$0xff] %v673_v59  ;;  %v684_v62 = vadd.f32 %v830_v61, %v620_v60 }
 0x359   : > { %v675_v63 = vpop.f32.mrf.mxu0 }
 0x35a   : > { %690 = vst [vmem:[%s385_s26 + $0x18] sm:$0xff] %v684_v62  ;;  %v676_v0 = vadd.f32 %v675_v63, %v610_v54 }
 0x35c   : > { %688 = vst [vmem:[%s385_s26 + $0x8] sm:$0xff] %v676_v0 }
 0x35d   : > { %897 = shalt.err (!%p894_p5)
}
 0x35e   : > { %s898_s25 = scalar_lea.hbm %s1119_s17, 512  ;;  %s902_s14 = scalar_lea.hbm %s1171_s9, 1024 }
 0x35f   : > { %p899_p7 = scmp.ne.s32.totalorder %s1119_s17, %s898_s25  ;;  %p903_p12 = scmp.lt.s32.totalorder %s1119_s17, %s1171_s9 }
 0x360   : > { %p904_p13 = scmp.lt.s32.totalorder %s902_s14, %s898_s25 }
 0x361   : > { %p900_p10 = pnand %p899_p7, %p1041_p6 }
 0x362   : > { %p905_p0 = por %p904_p13, %p903_p12 }
 0x363   : > { %p901_p11 = pneg %p900_p10 }
 0x365   : > { %p906_p1 = pnand %p905_p0, %p901_p11 }
 0x367   : > { %909 = shalt.err (!%p906_p1)
}
 0x368   : > { %s950_s13 = smov 128   ;;  %s951_s23 = smov 256  }
 0x369   : > { %s952_s24 = smov 8  }
 0x36a   : > { %831 = dma.vmem_to_hbm [thread:$0]  (%p1041_p6), %s1114_s27, 512, %s1119_s17, %s692_s21, %s950_s13, %s951_s23, %s952_s24  }
 0x36b PF: > { %s719_s26 = sand.u32 1, %s932_s30   ;;  %p834_p2 = pnand %p774_p9, %p1045_p8 }
 0x36c   : > { %s720_s25 = scalar_lea.sflag [#allocation4], %s719_s26 }
 0x36d   : > { %p835_p3 = pneg %p834_p2 }
 0x36f   : > { %927 = dma.done.wait (%p835_p3), %s720_s25, 512  }
 0x370   : > { %929 = vsyncadd (%p835_p3), %s720_s25, 4294966784  ;;  %p19_p4 = scmp.ge.s32.totalorder %s1026_s15, 4   ;;  %s1174_s30 = smov %s936_s10 }
 0x371   : > { %s1175_s10 = smov %s940_s11  ;;  %s1176_s11 = smov %s1039_s18 }
 0x372   : > { %s1177_s12 = smov %s1026_s15  ;;  %21 = sbr.rel (!%p19_p4) target bundleno = 3 (0x3), region = 137 }
 0x377   :  { %725 = vsyncpa [#allocation4], 1 }
 0x378   :  { %727 = vsyncpa [#allocation4 + $0x1], 1 }

</bundles_post_ra>
